<compile_context>
chip_gen: v7x
topology: tpu7x:2x2x1
jax: 0.10.0
libtpu: 0.0.40
codegen_flags: <defaults>
</compile_context>

<pallas_src>
import functools
import math

import jax
import jax.numpy as jnp
from jax.experimental import pallas as pl
from jax.experimental.pallas import tpu as pltpu


def adf_softmax_kernel(eps, xm_ref, xv_ref, om_ref, ov_ref):
    # Refs are (C, L_tile): channel (softmax axis) on sublanes, lanes dense.
    xm = xm_ref[...].astype(jnp.float32)
    xv = xv_ref[...].astype(jnp.float32)

    g = jnp.exp(xm + 0.5 * xv)                 # log-normal mean, exp(m + v/2)
    gv = (g * g) * (jnp.exp(xv) - 1.0)         # log-normal variance; exp(2m)=g^2

    const = jnp.sum(g, axis=0, keepdims=True) + eps   # (1, L_tile) denominator
    inv_c = 1.0 / const

    om_ref[...] = (g * inv_c).astype(om_ref.dtype)
    ov_ref[...] = (gv * (inv_c * inv_c)).astype(ov_ref.dtype)


def _pick_lane_tile(C, L, itemsize):
    # 4 resident tiles (xm, xv, om, ov), each double-buffered by the pipeline.
    # Keep the working set well under v7x's 64 MiB physical VMEM.
    budget_bytes = 8 * 1024 * 1024
    per_lane = 8 * C * itemsize
    max_lanes = max(128, budget_bytes // per_lane)
    if L <= max_lanes:
        return L                              # full extent: exempt from 128-div rule
    return max(128, (max_lanes // 128) * 128)  # multiple of 128; tail lanes masked


def adf_softmax(features_mean, features_variance, dim=1, eps=1e-5):
    shape = features_mean.shape
    dim = dim % len(shape)
    B = math.prod(shape[:dim]) if dim > 0 else 1
    C = shape[dim]
    L = math.prod(shape[dim + 1:]) if dim + 1 < len(shape) else 1

    # Free reshapes (merge contiguous leading / trailing axes, no data movement).
    xm = features_mean.reshape(B, C, L)
    xv = features_variance.reshape(B, C, L)
    out_dtype = features_mean.dtype

    l_tile = _pick_lane_tile(C, L, jnp.dtype(out_dtype).itemsize)
    grid = (B, pl.cdiv(L, l_tile))

    # Squeeze the batch dim; softmax axis C is always the full extent, so the
    # in-kernel reduction never sees padded data. Lane-tile padding only
    # affects independent (masked-on-writeback) columns.
    spec = pl.BlockSpec((None, C, l_tile), lambda b, l: (b, 0, l))

    kernel = functools.partial(adf_softmax_kernel, float(eps))
    om, ov = pl.pallas_call(
        kernel,
        out_shape=(
            jax.ShapeDtypeStruct((B, C, L), out_dtype),
            jax.ShapeDtypeStruct((B, C, L), out_dtype),
        ),
        grid=grid,
        in_specs=[spec, spec],
        out_specs=(
            pl.BlockSpec((None, C, l_tile), lambda b, l: (b, 0, l)),
            pl.BlockSpec((None, C, l_tile), lambda b, l: (b, 0, l)),
        ),
        compiler_params=pltpu.CompilerParams(
            dimension_semantics=("parallel", "parallel")),
    )(xm, xv)

    # TODO(synk): self._keep_variance_fn is None by default; a user-supplied
    # callback would be applied here as plain JAX on `ov`.
    return om.reshape(shape), ov.reshape(shape)


def reference(fm, fv, dim=1, eps=1e-5):
    lgm = fm + 0.5 * fv
    lgv = 2.0 * lgm
    lgm = jnp.exp(lgm)
    lgv = jnp.exp(lgv)
    lgv = lgv * (jnp.exp(fv) - 1.0)
    c = jnp.sum(lgm, axis=dim, keepdims=True) + eps
    return lgm / c, lgv / (c ** 2)


if __name__ == "__main__":
    key = jax.random.PRNGKey(0)
    k1, k2 = jax.random.split(key, 2)

    N, C, H, W = 2, 4, 16, 16
    eps = 1e-5

    features_mean = jax.random.normal(k1, (N, C, H, W), dtype=jnp.float32)
    features_variance = (
        jax.random.uniform(k2, (N, C, H, W), dtype=jnp.float32) + 0.1)

    out_mean, out_var = adf_softmax(features_mean, features_variance,
                                    dim=1, eps=eps)
    jax.block_until_ready((out_mean, out_var))

    ref_mean, ref_var = reference(features_mean, features_variance,
                                  dim=1, eps=eps)
    assert out_mean.shape == (N, C, H, W) and out_var.shape == (N, C, H, W)
    assert jnp.allclose(out_mean, ref_mean, atol=1e-5, rtol=1e-5)
    assert jnp.allclose(out_var, ref_var, atol=1e-4, rtol=1e-5)

    print("KERNEL_OK")
</pallas_src>

<mosaic_0001>
module attributes {stable_mosaic.version = 11 : i64} {
  func.func @adf_softmax_kernel(%arg0: i32, %arg1: i32, %arg2: memref<1x4x256xf32, #tpu.memory_space<vmem>>, %arg3: memref<1x4x256xf32, #tpu.memory_space<vmem>>, %arg4: memref<1x4x256xf32, #tpu.memory_space<vmem>>, %arg5: memref<1x4x256xf32, #tpu.memory_space<vmem>>) attributes {dimension_semantics = [#tpu.dimension_semantics<parallel>, #tpu.dimension_semantics<parallel>], iteration_bounds = array<i64: 2, 1>, scalar_prefetch = 0 : i64, scratch_operands = 0 : i64, tpu.core_type = #tpu.core_type<tc>, window_params = [{transform_indices = @transform_0, window_bounds = array<i64: 1, 4, 256>}, {transform_indices = @transform_1, window_bounds = array<i64: 1, 4, 256>}, {transform_indices = @transform_2, window_bounds = array<i64: 1, 4, 256>}, {transform_indices = @transform_3, window_bounds = array<i64: 1, 4, 256>}]} {
    %c0 = arith.constant 0 : index
    %c0_0 = arith.constant 0 : index
    %c0_1 = arith.constant 0 : index
    %0 = vector.load %arg2[%c0, %c0_0, %c0_1] : memref<1x4x256xf32, #tpu.memory_space<vmem>>, vector<1x4x256xf32>
    %1 = vector.shape_cast %0 : vector<1x4x256xf32> to vector<4x256xf32>
    %c0_2 = arith.constant 0 : index
    %c0_3 = arith.constant 0 : index
    %c0_4 = arith.constant 0 : index
    %2 = vector.load %arg3[%c0_2, %c0_3, %c0_4] : memref<1x4x256xf32, #tpu.memory_space<vmem>>, vector<1x4x256xf32>
    %3 = vector.shape_cast %2 : vector<1x4x256xf32> to vector<4x256xf32>
    %cst = arith.constant 5.000000e-01 : f32
    %4 = vector.broadcast %cst : f32 to vector<4x256xf32>
    %5 = arith.mulf %4, %3 : vector<4x256xf32>
    %6 = arith.addf %1, %5 : vector<4x256xf32>
    %7 = math.exp %6 : vector<4x256xf32>
    %8 = arith.mulf %7, %7 : vector<4x256xf32>
    %9 = math.exp %3 : vector<4x256xf32>
    %cst_5 = arith.constant 1.000000e+00 : f32
    %10 = vector.broadcast %cst_5 : f32 to vector<4x256xf32>
    %11 = arith.subf %9, %10 : vector<4x256xf32>
    %12 = arith.mulf %8, %11 : vector<4x256xf32>
    %cst_6 = arith.constant dense<0.000000e+00> : vector<256xf32>
    %13 = vector.multi_reduction <add>, %7, %cst_6 [0] : vector<4x256xf32> to vector<256xf32>
    %14 = vector.shape_cast %13 : vector<256xf32> to vector<1x256xf32>
    %cst_7 = arith.constant 9.99999974E-6 : f32
    %15 = vector.broadcast %cst_7 : f32 to vector<1x256xf32>
    %16 = arith.addf %14, %15 : vector<1x256xf32>
    %cst_8 = arith.constant 1.000000e+00 : f32
    %17 = vector.broadcast %cst_8 : f32 to vector<1x256xf32>
    %18 = arith.divf %17, %16 : vector<1x256xf32>
    %19 = vector.broadcast %18 : vector<1x256xf32> to vector<4x256xf32>
    %20 = arith.mulf %7, %19 : vector<4x256xf32>
    %c0_9 = arith.constant 0 : index
    %c0_10 = arith.constant 0 : index
    %c0_11 = arith.constant 0 : index
    %21 = vector.load %arg4[%c0_9, %c0_10, %c0_11] : memref<1x4x256xf32, #tpu.memory_space<vmem>>, vector<1x4x256xf32>
    %22 = vector.shape_cast %21 : vector<1x4x256xf32> to vector<4x256xf32>
    %23 = vector.shape_cast %20 : vector<4x256xf32> to vector<1x4x256xf32>
    tpu.vector_store %arg4[%c0_9, %c0_10, %c0_11], %23 {strides = array<i32>} : memref<1x4x256xf32, #tpu.memory_space<vmem>>, vector<1x4x256xf32>,
    %24 = arith.mulf %18, %18 : vector<1x256xf32>
    %25 = vector.broadcast %24 : vector<1x256xf32> to vector<4x256xf32>
    %26 = arith.mulf %12, %25 : vector<4x256xf32>
    %c0_12 = arith.constant 0 : index
    %c0_13 = arith.constant 0 : index
    %c0_14 = arith.constant 0 : index
    %27 = vector.load %arg5[%c0_12, %c0_13, %c0_14] : memref<1x4x256xf32, #tpu.memory_space<vmem>>, vector<1x4x256xf32>
    %28 = vector.shape_cast %27 : vector<1x4x256xf32> to vector<4x256xf32>
    %29 = vector.shape_cast %26 : vector<4x256xf32> to vector<1x4x256xf32>
    tpu.vector_store %arg5[%c0_12, %c0_13, %c0_14], %29 {strides = array<i32>} : memref<1x4x256xf32, #tpu.memory_space<vmem>>, vector<1x4x256xf32>,
    return
  }
  func.func @transform_0(%arg0: i32, %arg1: i32) -> (i32, i32, i32) {
    %c0_i32 = arith.constant 0 : i32
    %c0_i32_0 = arith.constant 0 : i32
    return %arg0, %c0_i32, %arg1 : i32, i32, i32
  }
  func.func @transform_1(%arg0: i32, %arg1: i32) -> (i32, i32, i32) {
    %c0_i32 = arith.constant 0 : i32
    %c0_i32_0 = arith.constant 0 : i32
    return %arg0, %c0_i32, %arg1 : i32, i32, i32
  }
  func.func @transform_2(%arg0: i32, %arg1: i32) -> (i32, i32, i32) {
    %c0_i32 = arith.constant 0 : i32
    %c0_i32_0 = arith.constant 0 : i32
    return %arg0, %c0_i32, %arg1 : i32, i32, i32
  }
  func.func @transform_3(%arg0: i32, %arg1: i32) -> (i32, i32, i32) {
    %c0_i32 = arith.constant 0 : i32
    %c0_i32_0 = arith.constant 0 : i32
    return %arg0, %c0_i32, %arg1 : i32, i32, i32
  }
}

</mosaic_0001>

<bundles_post_ra>
// kernel: tpu_custom_call.1
= control target key start
LH: loop header
LB: loop body
LE: loop exit
PB: predicated region body
PF: predicated region fallthrough
CT: control target
= control target key end

     0   :  { %9 = vsyncpa [#allocation3], 0  ;;  %s1067_s0 = inlined_call_operand.hbm [shape: f32[2,4,256], index: 0, kind: input, shape index: {}]   ;;  %s1068_s1 = inlined_call_operand.hbm [shape: f32[2,4,256], index: 1, kind: input, shape index: {}]   ;;  %s1069_s2 = inlined_call_operand.hbm [shape: f32[2,4,256], index: 2, kind: output, shape index: {0}]   ;;  %s1070_s3 = inlined_call_operand.hbm [shape: f32[2,4,256], index: 3, kind: output, shape index: {1}]  }
   0x1   :  { %11 = vsyncpa [#allocation3 + $0x1], 0 }
   0x2   :  { %12 = vsyncpa [#allocation6], 0 }
   0x3   :  { %14 = vsyncpa [#allocation6 + $0x1], 0 }
   0x4   :  { %15 = vsyncpa [#allocation4], 0 }
   0x5   :  { %17 = vsyncpa [#allocation4 + $0x1], 0 }
   0x6   :  { %18 = vsyncpa [#allocation9], 0 }
   0x7   :  { %20 = vsyncpa [#allocation9 + $0x1], 0  ;;  %s808_s12 = smov 0   ;;  %s810_s13 = smov 0  }
   0x8   :  { %s812_s14 = smov 0   ;;  %s814_s15 = smov 0  }
   0x9   :  { %s816_s16 = smov 0   ;;  %s818_s17 = smov 0  }
   0xa LB: > { %s496_s18 = sadd.s32 4294967295, %s782_s17   ;;  %s497_s19 = sadd.s32 4294967294, %s782_s17   ;;  %s782_s17 = sphi %s818_s17, %s26_s17   ;;  %s778_s16 = sphi %s816_s16, %s1090_s16   ;;  %s774_s15 = sphi %s814_s15, %s1089_s15   ;;  %s770_s14 = sphi %s812_s14, %s1088_s14   ;;  %s766_s13 = sphi %s810_s13, %s1087_s13   ;;  %s762_s12 = sphi %s808_s12, %s1086_s12  }
   0xb   : > { %s38_s20 = sadd.s32 1, %s778_s16  ;;  %s47_s21 = sadd.s32 1, %s770_s14 }
   0xc   : > { %p40_p0 = scmp.ge.s32.totalorder %s38_s20, 2  ;;  %p54_p1 = scmp.ne.s32.totalorder %s770_s14, %s766_s13 }
   0xd   : > { %p55_p2 = scmp.eq.s32.totalorder %s782_s17, 0  ;;  %p60_p3 = scmp.ne.s32.totalorder %s766_s13, %s762_s12 }
   0xe   : > { %s1092_s20 = smov (%p40_p0, %s38_s20), 0  ;;  %p61_p5 = scmp.eq.s32.totalorder %s496_s18, 0 }
   0xf   : > { %p849_p4 = por %p55_p2, %p54_p1  ;;  %s42_s23 = ssub.s32 %s778_s16, %s1092_s20 }
  0x10   : > { %p114_p6 = scmp.eq.s32.totalorder %s496_s18, 1  ;;  %p45_p7 = scmp.eq.s32.totalorder %s42_s23, 0 }
  0x11   : > { %p855_p8 = por %p61_p5, %p60_p3  ;;  %p120_p10 = scmp.eq.s32.totalorder %s497_s19, 1 }
  0x12   : > { %p859_p9 = por %p114_p6, %p54_p1  ;;  %p546_p13 = scmp.lt.s32.totalorder %s782_s17, 2 }
  0x13   : > { %s1074_s24 = scalar_select %p855_p8, 1, 0 }
  0x14   : > { %s1075_s25 = scalar_select %p859_p9, 1, 0 }
  0x15   : > { %s864_s26 = scalar_select %p45_p7, %s770_s14, %s47_s21  }
  0x16   : > { %p866_p11 = por %p120_p10, %p60_p3  ;;  %s873_s28 = sand.u32 1, %s770_s14  }
  0x17   : > { %s500_s29 = sshll.u32 %s873_s28, 3  ;;  %s520_s30 = sshll.u32 %s778_s16, 7 }
  0x18   : > { %s1076_s27 = scalar_select %p866_p11, 1, 0 }
  0x19   : > { %s882_s6 = scalar_lea.hbm %s1067_s0, %s520_s30  ;;  %s172_s7 = scalar_lea.vmem [#allocation2], %s500_s29 }
  0x1a   : > { %s182_s8 = sshll.u32 %s172_s7, 4  ;;  %p890_p0 = pnand %p546_p13, %p849_p4  ;;  %s886_s8 = int_to_ptr.vmem [resolvable:$true] %s182_s8 }
  0x1b   : > { %s169_s10 = scalar_lea.sflag [#allocation3], %s873_s28  ;;  %s604_s11 = scalar_lea.hbm %s882_s6, 128 }
  0x1c   : > { %p605_p3 = scmp.ne.s32.totalorder %s882_s6, %s604_s11  ;;  %p606_p5 = pneg %p890_p0 }
  0x1d   : > { %s609_s21 = scalar_lea.hbm %s1067_s0, 256  ;;  %p610_p4 = scmp.lt.u32.totalorder %s882_s6, %s1067_s0 }
  0x1e   : > { %p607_p6 = pnand %p606_p5, %p605_p3  ;;  %p611_p10 = scmp.lt.u32.totalorder %s609_s21, %s604_s11 }
  0x1f   : > { %p613_p12 = scmp.lt.u32.totalorder %s604_s11, %s882_s6 }
  0x20   : > { %p608_p7 = pneg %p607_p6  ;;  %p612_p13 = por %p611_p10, %p610_p4 }
  0x22   : > { %p614_p1 = por %p613_p12, %p612_p13 }
  0x24   : > { %p615_p2 = pnand %p614_p1, %p608_p7 }
  0x26   : > { %618 = shalt.err (!%p615_p2)
}
  0x27   : > { %s619_s4 = scalar_lea.vmem %s886_s8, 128  ;;  %s784_s5 = smov [#allocation2]  }
  0x28   : > { %p620_p3 = scmp.ne.s32.totalorder %s886_s8, %s619_s4  ;;  %s624_s7 = sshll.u32 %s784_s5, 4  ;;  %s625_s7 = int_to_ptr.vmem [resolvable:$false] %s624_s7 }
  0x29   : > { %s626_s18 = scalar_lea.vmem %s625_s7, 256  ;;  %p627_p9 = scmp.lt.s32.totalorder %s886_s8, %s625_s7 }
  0x2a   : > { %p622_p6 = pnand %p620_p3, %p606_p5  ;;  %p628_p4 = scmp.lt.s32.totalorder %s626_s18, %s619_s4 }
  0x2c   : > { %p623_p11 = pneg %p622_p6  ;;  %p629_p10 = por %p628_p4, %p627_p9 }
  0x2e   : > { %p630_p12 = pnand %p629_p10, %p623_p11 }
  0x30   : > { %633 = shalt.err (!%p630_p12)
}
  0x31   : > { %535 = dma.hbm_to_vmem [thread:$0]  (!%p890_p0), %s882_s6, 128, %s886_s8, %s169_s10  }
  0x32   : > { %p1078_p1 = scmp.lt.s32.totalorder %s782_s17, 3  ;;  %p1079_p2 = scmp.ge.s32.totalorder %s782_s17, 1 }
  0x33   : > { %s935_s22 = scalar_lea.hbm %s1068_s1, %s520_s30  ;;  %s193_s23 = scalar_lea.vmem [#allocation5], %s500_s29 }
  0x34   : > { %p926_p7 = pnand %p1079_p2, %p1078_p1  ;;  %s203_s4 = sshll.u32 %s193_s23, 4  ;;  %s204_s4 = int_to_ptr.vmem [resolvable:$true] %s203_s4 }
  0x35   : > { %s190_s6 = scalar_lea.sflag [#allocation6], %s873_s28  ;;  %s634_s8 = scalar_lea.hbm %s935_s22, 128 }
  0x36   : > { %s1080_s11 = scalar_select %p926_p7, 1, 0 }
  0x37   : > { %p635_p9 = scmp.ne.s32.totalorder %s935_s22, %s634_s8  ;;  %s639_s30 = scalar_lea.hbm %s1068_s1, 256 }
  0x38   : > { %p640_p3 = scmp.lt.u32.totalorder %s935_s22, %s1068_s1  ;;  %p641_p6 = scmp.lt.u32.totalorder %s639_s30, %s634_s8 }
  0x39   : > { %p637_p11 = pnand %p635_p9, %p606_p5  ;;  %p643_p10 = scmp.lt.u32.totalorder %s634_s8, %s935_s22 }
  0x3a   : > { %p642_p4 = por %p641_p6, %p640_p3 }
  0x3b   : > { %p638_p13 = pneg %p637_p11 }
  0x3c   : > { %p644_p12 = por %p643_p10, %p642_p4 }
  0x3e   : > { %p645_p1 = pnand %p644_p12, %p638_p13 }
  0x40   : > { %648 = shalt.err (!%p645_p1)
}
  0x41   : > { %s649_s28 = scalar_lea.vmem %s204_s4, 128  ;;  %s785_s29 = smov [#allocation5]  }
  0x42   : > { %p650_p2 = scmp.ne.s32.totalorder %s204_s4, %s649_s28  ;;  %s654_s19 = sshll.u32 %s785_s29, 4  ;;  %s655_s19 = int_to_ptr.vmem [resolvable:$false] %s654_s19 }
  0x43   : > { %s656_s21 = scalar_lea.vmem %s655_s19, 256  ;;  %p657_p8 = scmp.lt.s32.totalorder %s204_s4, %s655_s19 }
  0x44   : > { %p652_p9 = pnand %p650_p2, %p606_p5  ;;  %p658_p7 = scmp.lt.s32.totalorder %s656_s21, %s649_s28 }
  0x46   : > { %p653_p11 = pneg %p652_p9  ;;  %p659_p3 = por %p658_p7, %p657_p8 }
  0x48   : > { %p660_p6 = pnand %p659_p3, %p653_p11 }
  0x4a   : > { %663 = shalt.err (!%p660_p6)
}
  0x4b   : > { %538 = dma.hbm_to_vmem [thread:$0]  (!%p890_p0), %s935_s22, 128, %s204_s4, %s190_s6  }
  0x4c   : > { %p1081_p13 = scmp.ne.s32.totalorder %s1080_s11, 0 }
  0x4d   : > { %s962_s23 = sand.u32 (!%p1081_p13), 1, %s766_s13   ;;  %p1082_p8 = scmp.ne.s32.totalorder (!%p1081_p13), %s1074_s24, 0 }
  0x4e   : > { %212 = sbr.rel (%p1081_p13) target bundleno = 175 (0xaf), region = 28  ;;  %s965_s8 = sshll.u32 (!%p1081_p13), %s962_s23, 3 }
  0x4f   : > { %s215_s10 = scalar_lea.sflag (!%p1081_p13), [#allocation3], %s962_s23  ;;  %s218_s5 = scalar_lea.vmem (!%p1081_p13), [#allocation2], %s965_s8 }
  0x55   : > { %745 = dma.done.wait (%p1082_p8), %s215_s10, 128  }
  0x56   : > { %747 = vsyncadd (%p1082_p8), %s215_s10, 4294967168  ;;  %s224_s9 = scalar_lea.sflag [#allocation6], %s962_s23  ;;  %s227_s11 = scalar_lea.vmem [#allocation5], %s965_s8 }
  0x57   : > { %749 = dma.done.wait (%p1082_p8), %s224_s9, 128  }
  0x58   : > { %751 = vsyncadd (%p1082_p8), %s224_s9, 4294967168  ;;  %v264_v0 = vld [vmem:[%s218_s5] sm:$0xff]  ;;  %v265_v1 = vld [vmem:[%s227_s11] sm:$0xff]  ;;  %vm278_vm0 = vcmask 1043456   ;;  %s252_s24 = scalar_lea.vmem [#allocation7], %s965_s8  ;;  %s522_s4 = sshll.u32 %s774_s15, 7 }
  0x59   : > { %v266_v2 = vmul.f32 0.5, %v265_v1  ;;  %v271_v16 = vmul.f32 1.442695, %v265_v1  ;;  %s335_s22 = sshll.u32 %s252_s24, 4  ;;  %s259_s6 = scalar_lea.vmem [#allocation8], %s965_s8  ;;  %s984_s22 = int_to_ptr.vmem [resolvable:$true] %s335_s22 }
  0x5a   : > { %s351_s30 = sshll.u32 %s259_s6, 4  ;;  %s989_s28 = scalar_lea.hbm %s1069_s2, %s522_s4  ;;  %s991_s30 = int_to_ptr.vmem [resolvable:$true] %s351_s30 }
  0x5b   : > { %v267_v3 = vadd.f32 %v266_v2, %v264_v0  ;;  %s996_s19 = scalar_lea.hbm %s1070_s3, %s522_s4  ;;  %s314_s21 = scalar_lea.sflag [#allocation4], %s962_s23 }
  0x5c   : > { %s664_s10 = scalar_lea.vmem %s984_s22, 128  ;;  %p1083_p5 = scmp.ne.s32.totalorder %s1075_s25, 0 }
  0x5d   : > { %v268_v4 = vmul.f32 1.442695, %v267_v3  ;;  %p665_p0 = scmp.ne.s32.totalorder %s984_s22, %s664_s10  ;;  %s786_s5 = smov [#allocation7]  }
  0x5e   : > { %s668_s9 = sshll.u32 %s786_s5, 4  ;;  %s669_s9 = int_to_ptr.vmem [resolvable:$false] %s668_s9 }
  0x5f   : > { %596 = vpow2.f32 %v268_v4  ;;  %p666_p7 = pnand %p665_p0, %p1083_p5  ;;  %s670_s11 = scalar_lea.vmem %s669_s9, 256 }
  0x60   : > { %598 = vpow2.f32 %v271_v16  ;;  %p671_p10 = scmp.lt.s32.totalorder %s984_s22, %s669_s9  ;;  %p672_p12 = scmp.lt.s32.totalorder %s670_s11, %s664_s10 }
  0x61   : > { %p667_p4 = pneg %p666_p7 }
  0x62   : > { %p673_p1 = por %p672_p12, %p671_p10 }
  0x64   : > { %p674_p2 = pnand %p673_p1, %p667_p4 }
  0x69   : > { %v597_v5 = vpop.eup %596 }
  0x6a   : > { %v276_v6 = vcombine.high %v597_v5, %v597_v5  ;;  %v279_v7 = vsel %vm278_vm0, %v597_v5, 0.0  ;;  %v599_v24 = vpop.eup %598  ;;  %v270_v25 = vmul.f32 %v597_v5, %v597_v5 }
  0x6b   : > { %v280_v8 = vrot.slane %v279_v7, 4  ;;  %v511_v26 = vadd.f32 -1.0, %v599_v24 }
  0x6c   : > { %v286_v9 = vsel %vm278_vm0, %v276_v6, 0.0 }
  0x6d   : > { %v281_v10 = vadd.f32 %v280_v8, %v279_v7  ;;  %v287_v11 = vrot.slane %v286_v9, 4  ;;  %v274_v31 = vmul.f32 %v511_v26, %v270_v25 }
  0x6f   : > { %v282_v12 = vrot.slane %v281_v10, 2  ;;  %v288_v13 = vadd.f32 %v287_v11, %v286_v9 }
  0x71   : > { %v283_v14 = vadd.f32 %v282_v12, %v281_v10  ;;  %v289_v15 = vrot.slane %v288_v13, 2 }
  0x73   : > { %v284_v17 = vrot.slane %v283_v14, 1  ;;  %v290_v18 = vadd.f32 %v289_v15, %v288_v13 }
  0x75   : > { %v285_v19 = vadd.f32 %v284_v17, %v283_v14  ;;  %v291_v20 = vrot.slane %v290_v18, 1 }
  0x77   : > { %v292_v21 = vadd.f32 %v291_v20, %v290_v18  ;;  %v293_v22 = vadd.f32 1e-05, %v285_v19 }
  0x79   : > { %v294_v23 = vadd.f32 1e-05, %v292_v21  ;;  %600 = vrcp.f32 %v293_v22 }
  0x7b   : > { %602 = vrcp.f32 %v294_v23 }
  0x83   : > { %v601_v27 = vpop.eup %600 }
  0x84   : > { %v305_v28 = vmul.f32 %v601_v27, %v601_v27 }
  0x85   : > { %v603_v29 = vpop.eup %602 }
  0x86   : > { %v301_v30 = vcombine.low %v601_v27, %v603_v29  ;;  %v306_v32 = vmul.f32 %v603_v29, %v603_v29 }
  0x88   : > { %v303_v33 = vmul.f32 %v597_v5, %v301_v30  ;;  %v309_v34 = vcombine.low %v305_v28, %v306_v32 }
  0x8a   : > { %304 = vst [vmem:[%s252_s24] sm:$0xff] %v303_v33  ;;  %v311_v35 = vmul.f32 %v309_v34, %v274_v31 }
  0x8b   : > { %677 = shalt.err (!%p674_p2)
}
  0x8c   : > { %s678_s24 = scalar_lea.hbm %s989_s28, 128  ;;  %s682_s18 = scalar_lea.hbm %s1069_s2, 256 }
  0x8d   : > { %p679_p9 = scmp.ne.s32.totalorder %s989_s28, %s678_s24  ;;  %p683_p6 = scmp.lt.u32.totalorder %s989_s28, %s1069_s2 }
  0x8e   : > { %p684_p13 = scmp.lt.u32.totalorder %s682_s18, %s678_s24  ;;  %p686_p0 = scmp.lt.u32.totalorder %s678_s24, %s989_s28 }
  0x8f   : > { %p680_p11 = pnand %p679_p9, %p1083_p5 }
  0x90   : > { %p685_p8 = por %p684_p13, %p683_p6 }
  0x91   : > { %p681_p3 = pneg %p680_p11 }
  0x92   : > { %p687_p7 = por %p686_p0, %p685_p8 }
  0x94   : > { %p688_p4 = pnand %p687_p7, %p681_p3 }
  0x96   : > { %691 = shalt.err (!%p688_p4)
}
  0x97   : > { %528 = dma.vmem_to_hbm [thread:$0]  (%p1083_p5), %s984_s22, 128, %s989_s28, %s314_s21   ;;  %312 = vst [vmem:[%s259_s6] sm:$0xff] %v311_v35 }
  0x98   : > { %s319_s10 = scalar_lea.sflag [#allocation9], %s962_s23  ;;  %s692_s5 = scalar_lea.vmem %s991_s30, 128 }
  0x99   : > { %p693_p10 = scmp.ne.s32.totalorder %s991_s30, %s692_s5  ;;  %s787_s9 = smov [#allocation8]  }
  0x9a   : > { %s696_s11 = sshll.u32 %s787_s9, 4  ;;  %s697_s11 = int_to_ptr.vmem [resolvable:$false] %s696_s11 }
  0x9b   : > { %p694_p12 = pnand %p693_p10, %p1083_p5  ;;  %s698_s24 = scalar_lea.vmem %s697_s11, 256 }
  0x9c   : > { %p699_p2 = scmp.lt.s32.totalorder %s991_s30, %s697_s11  ;;  %p700_p9 = scmp.lt.s32.totalorder %s698_s24, %s692_s5 }
  0x9d   : > { %p695_p1 = pneg %p694_p12 }
  0x9e   : > { %p701_p11 = por %p700_p9, %p699_p2 }
  0xa0   : > { %p702_p3 = pnand %p701_p11, %p695_p1 }
  0xa2   : > { %705 = shalt.err (!%p702_p3)
}
  0xa3   : > { %s706_s23 = scalar_lea.hbm %s996_s19, 128  ;;  %s710_s6 = scalar_lea.hbm %s1070_s3, 256 }
  0xa4   : > { %p707_p6 = scmp.ne.s32.totalorder %s996_s19, %s706_s23  ;;  %p711_p0 = scmp.lt.u32.totalorder %s996_s19, %s1070_s3 }
  0xa5   : > { %p712_p7 = scmp.lt.u32.totalorder %s710_s6, %s706_s23  ;;  %p714_p10 = scmp.lt.u32.totalorder %s706_s23, %s996_s19 }
  0xa6   : > { %p708_p13 = pnand %p707_p6, %p1083_p5 }
  0xa7   : > { %p713_p4 = por %p712_p7, %p711_p0 }
  0xa8   : > { %p709_p8 = pneg %p708_p13 }
  0xa9   : > { %p715_p12 = por %p714_p10, %p713_p4 }
  0xab   : > { %p716_p1 = pnand %p715_p12, %p709_p8 }
  0xad   : > { %719 = shalt.err (!%p716_p1)
}
  0xae   : > { %529 = dma.vmem_to_hbm [thread:$0]  (%p1083_p5), %s991_s30, 128, %s996_s19, %s319_s10  }
  0xaf PF: > { %s363_s4 = sand.u32 1, %s762_s12   ;;  %p1084_p2 = scmp.ne.s32.totalorder %s1076_s27, 0 }
  0xb0   : > { %p1085_p9 = scmp.ge.s32.totalorder %s782_s17, 2  ;;  %s364_s7 = scalar_lea.sflag [#allocation4], %s363_s4 }
  0xb2   : > { %p540_p11 = pnand %p1085_p9, %p1084_p2 }
  0xb4   : > { %753 = dma.done.wait (!%p540_p11), %s364_s7, 128  }
  0xb5   : > { %755 = vsyncadd (!%p540_p11), %s364_s7, 4294967168  ;;  %s373_s18 = scalar_lea.sflag [#allocation9], %s363_s4 }
  0xb6   : > { %757 = dma.done.wait (!%p540_p11), %s373_s18, 128  }
  0xb7   : > { %759 = vsyncadd (!%p540_p11), %s373_s18, 4294967168  ;;  %s26_s17 = sadd.s32 1, %s782_s17   ;;  %s1086_s12 = smov %s766_s13 }
  0xb8   : > { %p23_p3 = scmp.ge.s32.totalorder %s26_s17, 4   ;;  %s1087_s13 = smov %s770_s14 }
  0xb9   : > { %s1088_s14 = smov %s864_s26  ;;  %s1089_s15 = smov %s778_s16 }
  0xba   : > { %s1090_s16 = smov %s1092_s20  ;;  %25 = sbr.rel (!%p23_p3) target bundleno = 10 (0xa), region = 103 }
  0xc1   :  { %378 = vsyncpa [#allocation3], 1 }
  0xc2   :  { %380 = vsyncpa [#allocation3 + $0x1], 1 }
  0xc3   :  { %381 = vsyncpa [#allocation6], 1 }
  0xc4   :  { %383 = vsyncpa [#allocation6 + $0x1], 1 }
  0xc5   :  { %384 = vsyncpa [#allocation4], 1 }
  0xc6   :  { %386 = vsyncpa [#allocation4 + $0x1], 1 }
  0xc7   :  { %387 = vsyncpa [#allocation9], 1 }
  0xc8   :  { %389 = vsyncpa [#allocation9 + $0x1], 1 }

</bundles_post_ra>
